<compile_context>
chip_gen: v7x
topology: tpu7x:2x2x1
jax: 0.10.0
libtpu: 0.0.40
codegen_flags: <defaults>
</compile_context>

<pallas_src>
import functools
import math

import jax
import jax.numpy as jnp
from jax.experimental import pallas as pl
from jax.experimental.pallas import tpu as pltpu


# ------------------------------- Pallas kernel --------------------------------

def _clean_lstm_kernel(*refs, num_layers, hidden_size, eps=1e-5):
    """Fused CleanLSTM forward.

    Ref order:
      xcat, [wblk_l, h0_l, c0_l] * num_layers, wo_pad, bo_pad,   (inputs)
      packed_out                                                  (output)
    packed_out layout: [h_0 | c_0 | h_1 | c_1 | ... | h2o_out(padded to 128)]
    """
    n_in = 1 + 3 * num_layers + 2
    in_refs = refs[:n_in]
    out_ref = refs[n_in]

    xcat_ref = in_refs[0]
    wo_ref, bo_ref = in_refs[n_in - 2], in_refs[n_in - 1]
    H = hidden_size
    G = 4 * H

    def batchnorm(g):
        # BatchNorm1d, training-mode batch statistics, affine = (1, 0).
        mean = jnp.mean(g, axis=0, keepdims=True)
        cen = g - mean
        var = jnp.mean(cen * cen, axis=0, keepdims=True)
        return cen * jax.lax.rsqrt(var + eps)

    def sigmoid(t):
        return 1.0 / (1.0 + jnp.exp(-t))

    cur = xcat_ref[...]
    packed = []
    for l in range(num_layers):
        wblk_ref, h0_ref, c0_ref = in_refs[1 + 3 * l: 1 + 3 * (l + 1)]
        h0 = h0_ref[...]
        c0 = c0_ref[...]

        # One MXU matmul per layer: [cur | h0] @ [[Wx,0],[0,Wh]] -> [gx | gh].
        inp = jnp.concatenate([cur, h0], axis=1)
        gboth = jnp.dot(inp, wblk_ref[...],
                        preferred_element_type=jnp.float32)
        # BN is per-column, so one BN over the 2*G columns == BN(gx), BN(gh).
        bn = batchnorm(gboth)
        gates = bn[:, :G] + bn[:, G:]

        f = sigmoid(gates[:, 0 * H:1 * H])
        i = sigmoid(gates[:, 1 * H:2 * H])
        o = sigmoid(gates[:, 2 * H:3 * H])
        g = jnp.tanh(gates[:, 3 * H:4 * H])

        c = f * c0 + i * g
        h = o * jnp.tanh(c)
        packed += [h, c]
        cur = h

    # Output projection (weights padded to 128 lanes -> full-lane result).
    out = jnp.dot(cur, wo_ref[...], preferred_element_type=jnp.float32) \
        + bo_ref[...]

    # Single lane-dense store of all new states + the projected output.
    out_ref[...] = jnp.concatenate(packed + [out], axis=1)


# --------------------------------- wrapper -------------------------------------

_OPAD = 128  # h2o output padded to 128 lanes so the final store is unmasked.


def clean_lstm_forward(params, x, y, initial_states):
    """x: (B, Fx), y: (B, Fy) with Fx+Fy = input_size-1.

    Returns (out (B, output_size), [(h_l, c_l)] * num_layers) matching
    CleanLSTM.forward.
    """
    num_layers = len(params["layers"])
    H = params["layers"][0]["wh"].shape[0]
    O = params["h2o_w"].shape[1]
    G = 4 * H

    xcat = jnp.concatenate([x, y], axis=1).astype(jnp.float32)
    B, F0 = xcat.shape

    def full(shape):
        return pl.BlockSpec(shape, lambda i, _n=len(shape): (0,) * _n)

    inputs = [xcat]
    in_specs = [full((B, F0))]
    for l in range(num_layers):
        lp = params["layers"][l]
        h0, c0 = initial_states[l]
        wx = lp["wx"].astype(jnp.float32)        # (in_l, 4H)
        wh = lp["wh"].astype(jnp.float32)        # (H,    4H)
        in_l = wx.shape[0]
        # Block-diagonal fused gate weight: (in_l + H, 8H).
        wblk = jnp.zeros((in_l + H, 2 * G), jnp.float32)
        wblk = wblk.at[:in_l, :G].set(wx)
        wblk = wblk.at[in_l:, G:].set(wh)
        inputs += [wblk, h0.astype(jnp.float32), c0.astype(jnp.float32)]
        in_specs += [full(wblk.shape), full((B, H)), full((B, H))]

    wo = jnp.zeros((H, _OPAD), jnp.float32)
    wo = wo.at[:, :O].set(params["h2o_w"].astype(jnp.float32))
    bo = jnp.zeros((1, _OPAD), jnp.float32)
    bo = bo.at[:, :O].set(params["h2o_b"].reshape(1, O).astype(jnp.float32))
    inputs += [wo, bo]
    in_specs += [full((H, _OPAD)), full((1, _OPAD))]

    total_w = 2 * num_layers * H + _OPAD

    kern = functools.partial(
        _clean_lstm_kernel, num_layers=num_layers, hidden_size=H)

    packed = pl.pallas_call(
        kern,
        grid=(1,),
        out_shape=jax.ShapeDtypeStruct((B, total_w), jnp.float32),
        in_specs=in_specs,
        out_specs=full((B, total_w)),
        compiler_params=pltpu.CompilerParams(
            dimension_semantics=("arbitrary",)),
    )(*inputs)

    new_states = []
    for l in range(num_layers):
        h = packed[:, (2 * l) * H:(2 * l + 1) * H]
        c = packed[:, (2 * l + 1) * H:(2 * l + 2) * H]
        new_states.append((h, c))
    out = packed[:, 2 * num_layers * H: 2 * num_layers * H + O]
    return out, new_states


# ------------------------- pure-JAX reference (check) --------------------------

def clean_lstm_reference(params, x, y, initial_states, eps=1e-5):
    def batchnorm(g):
        mean = jnp.mean(g, axis=0, keepdims=True)
        cen = g - mean
        var = jnp.mean(cen * cen, axis=0, keepdims=True)
        return cen * jax.lax.rsqrt(var + eps)

    def sigmoid(t):
        return 1.0 / (1.0 + jnp.exp(-t))

    hi = jax.lax.Precision.HIGHEST
    H = params["layers"][0]["wh"].shape[0]
    cur = jnp.concatenate([x, y], axis=1).astype(jnp.float32)
    new_states = []
    for l, lp in enumerate(params["layers"]):
        h0, c0 = initial_states[l]
        gx = jnp.dot(cur, lp["wx"], preferred_element_type=jnp.float32,
                     precision=hi)
        gh = jnp.dot(h0, lp["wh"], preferred_element_type=jnp.float32,
                     precision=hi)
        gates = batchnorm(gx) + batchnorm(gh)
        f = sigmoid(gates[:, 0 * H:1 * H])
        i = sigmoid(gates[:, 1 * H:2 * H])
        o = sigmoid(gates[:, 2 * H:3 * H])
        g = jnp.tanh(gates[:, 3 * H:4 * H])
        c = f * c0 + i * g
        h = o * jnp.tanh(c)
        new_states.append((h, c))
        cur = h
    out = jnp.dot(cur, params["h2o_w"], preferred_element_type=jnp.float32,
                  precision=hi) + params["h2o_b"]
    return out, new_states


# --------------------------------- params init --------------------------------

def init_params(key, input_size, output_size, hidden_size, num_layers=2):
    """PyTorch-style nn.Linear init: U(-1/sqrt(fan_in), 1/sqrt(fan_in))."""
    def lin_w(k, fan_in, fan_out):
        bound = 1.0 / math.sqrt(fan_in)
        return jax.random.uniform(k, (fan_in, fan_out), jnp.float32,
                                  -bound, bound)

    keys = jax.random.split(key, num_layers + 1)
    layers = []
    for i in range(num_layers):
        in_sz = (input_size - 1) if i == 0 else hidden_size
        kx, kh = jax.random.split(keys[i])
        layers.append(dict(
            wx=lin_w(kx, in_sz, 4 * hidden_size),        # Wx (bias=False)
            wh=lin_w(kh, hidden_size, 4 * hidden_size),   # Wh (bias=False)
        ))
    kw, kb = jax.random.split(keys[-1])
    bound = 1.0 / math.sqrt(hidden_size)
    h2o_w = lin_w(kw, hidden_size, output_size)
    h2o_b = jax.random.uniform(kb, (output_size,), jnp.float32, -bound, bound)
    return dict(layers=layers, h2o_w=h2o_w, h2o_b=h2o_b)


# ------------------------------------ main -------------------------------------

if __name__ == "__main__":
    input_size, output_size, hidden_size, num_layers = 9, 8, 32, 2
    B, Fx, Fy = 8, 5, 3                     # Fx + Fy == input_size - 1 == 8

    key = jax.random.PRNGKey(0)
    kp, kx, ky, ks = jax.random.split(key, 4)
    params = init_params(kp, input_size, output_size, hidden_size, num_layers)

    x = jax.random.normal(kx, (B, Fx), jnp.float32)
    y = jax.random.normal(ky, (B, Fy), jnp.float32)

    # initial_states=None in the reference -> torch.randn; deterministic here.
    skeys = jax.random.split(ks, 2 * num_layers)
    initial_states = [
        (jax.random.normal(skeys[2 * l], (B, hidden_size), jnp.float32),
         jax.random.normal(skeys[2 * l + 1], (B, hidden_size), jnp.float32))
        for l in range(num_layers)
    ]

    fwd = jax.jit(clean_lstm_forward)
    out, new_states = fwd(params, x, y, initial_states)
    out = jax.block_until_ready(out)

    # Shape / sanity checks.
    assert out.shape == (B, output_size)
    assert bool(jnp.all(jnp.isfinite(out)))
    assert len(new_states) == num_layers
    for h, c in new_states:
        assert h.shape == (B, hidden_size) and c.shape == (B, hidden_size)
        assert bool(jnp.all(jnp.isfinite(h))) and bool(jnp.all(jnp.isfinite(c)))

    # Numerical check against an equivalent pure-JAX forward.
    ref_out, ref_states = clean_lstm_reference(params, x, y, initial_states)
    err = jnp.max(jnp.abs(out - ref_out))
    for (h, c), (rh, rc) in zip(new_states, ref_states):
        err = jnp.maximum(err, jnp.max(jnp.abs(h - rh)))
        err = jnp.maximum(err, jnp.max(jnp.abs(c - rc)))
    assert float(err) < 2e-2, f"max abs error vs reference = {float(err)}"

    print("KERNEL_OK")
</pallas_src>

<mosaic_0001>
module attributes {stable_mosaic.version = 11 : i64} {
  func.func @_clean_lstm_kernel(%arg0: i32, %arg1: memref<8x8xf32, #tpu.memory_space<vmem>>, %arg2: memref<40x256xf32, #tpu.memory_space<vmem>>, %arg3: memref<8x32xf32, #tpu.memory_space<vmem>>, %arg4: memref<8x32xf32, #tpu.memory_space<vmem>>, %arg5: memref<64x256xf32, #tpu.memory_space<vmem>>, %arg6: memref<8x32xf32, #tpu.memory_space<vmem>>, %arg7: memref<8x32xf32, #tpu.memory_space<vmem>>, %arg8: memref<32x128xf32, #tpu.memory_space<vmem>>, %arg9: memref<1x128xf32, #tpu.memory_space<vmem>>, %arg10: memref<8x256xf32, #tpu.memory_space<vmem>>) attributes {dimension_semantics = [#tpu.dimension_semantics<arbitrary>], iteration_bounds = array<i64: 1>, scalar_prefetch = 0 : i64, scratch_operands = 0 : i64, tpu.core_type = #tpu.core_type<tc>, window_params = [{pipeline_mode = #tpu.pipeline_mode<synchronous>, transform_indices = @transform_0, window_bounds = array<i64: 8, 8>}, {pipeline_mode = #tpu.pipeline_mode<synchronous>, transform_indices = @transform_1, window_bounds = array<i64: 40, 256>}, {pipeline_mode = #tpu.pipeline_mode<synchronous>, transform_indices = @transform_2, window_bounds = array<i64: 8, 32>}, {pipeline_mode = #tpu.pipeline_mode<synchronous>, transform_indices = @transform_3, window_bounds = array<i64: 8, 32>}, {pipeline_mode = #tpu.pipeline_mode<synchronous>, transform_indices = @transform_4, window_bounds = array<i64: 64, 256>}, {pipeline_mode = #tpu.pipeline_mode<synchronous>, transform_indices = @transform_5, window_bounds = array<i64: 8, 32>}, {pipeline_mode = #tpu.pipeline_mode<synchronous>, transform_indices = @transform_6, window_bounds = array<i64: 8, 32>}, {pipeline_mode = #tpu.pipeline_mode<synchronous>, transform_indices = @transform_7, window_bounds = array<i64: 32, 128>}, {pipeline_mode = #tpu.pipeline_mode<synchronous>, transform_indices = @transform_8, window_bounds = array<i64: 1, 128>}, {pipeline_mode = #tpu.pipeline_mode<synchronous>, transform_indices = @transform_9, window_bounds = array<i64: 8, 256>}]} {
    %c0 = arith.constant 0 : index
    %c0_0 = arith.constant 0 : index
    %0 = vector.load %arg1[%c0, %c0_0] : memref<8x8xf32, #tpu.memory_space<vmem>>, vector<8x8xf32>
    %c0_1 = arith.constant 0 : index
    %c0_2 = arith.constant 0 : index
    %1 = vector.load %arg3[%c0_1, %c0_2] : memref<8x32xf32, #tpu.memory_space<vmem>>, vector<8x32xf32>
    %c0_3 = arith.constant 0 : index
    %c0_4 = arith.constant 0 : index
    %2 = vector.load %arg4[%c0_3, %c0_4] : memref<8x32xf32, #tpu.memory_space<vmem>>, vector<8x32xf32>
    %3 = tpu.concatenate %0, %1 in 1 : vector<8x8xf32>, vector<8x32xf32> -> vector<8x40xf32>
    %c0_5 = arith.constant 0 : index
    %c0_6 = arith.constant 0 : index
    %4 = vector.load %arg2[%c0_5, %c0_6] : memref<40x256xf32, #tpu.memory_space<vmem>>, vector<40x256xf32>
    %cst = arith.constant dense<0.000000e+00> : vector<8x256xf32>
    %5 = tpu.matmul %3, %4, %cst {dimension_numbers = #tpu.dot_dimension_numbers<[1], [0], [0], [1], [0, 0, 1, 1], [], []>} : vector<8x40xf32>, vector<40x256xf32>, vector<8x256xf32> -> vector<8x256xf32>
    %cst_7 = arith.constant dense<0.000000e+00> : vector<256xf32>
    %6 = vector.multi_reduction <add>, %5, %cst_7 [0] : vector<8x256xf32> to vector<256xf32>
    %7 = vector.shape_cast %6 : vector<256xf32> to vector<1x256xf32>
    %cst_8 = arith.constant 8.000000e+00 : f32
    %8 = vector.broadcast %cst_8 : f32 to vector<1x256xf32>
    %9 = arith.divf %7, %8 : vector<1x256xf32>
    %10 = vector.broadcast %9 : vector<1x256xf32> to vector<8x256xf32>
    %11 = arith.subf %5, %10 : vector<8x256xf32>
    %12 = arith.mulf %11, %11 : vector<8x256xf32>
    %cst_9 = arith.constant dense<0.000000e+00> : vector<256xf32>
    %13 = vector.multi_reduction <add>, %12, %cst_9 [0] : vector<8x256xf32> to vector<256xf32>
    %14 = vector.shape_cast %13 : vector<256xf32> to vector<1x256xf32>
    %cst_10 = arith.constant 8.000000e+00 : f32
    %15 = vector.broadcast %cst_10 : f32 to vector<1x256xf32>
    %16 = arith.divf %14, %15 : vector<1x256xf32>
    %cst_11 = arith.constant 9.99999974E-6 : f32
    %17 = vector.broadcast %cst_11 : f32 to vector<1x256xf32>
    %18 = arith.addf %16, %17 : vector<1x256xf32>
    %19 = math.rsqrt %18 : vector<1x256xf32>
    %20 = vector.broadcast %19 : vector<1x256xf32> to vector<8x256xf32>
    %21 = arith.mulf %11, %20 : vector<8x256xf32>
    %22 = vector.extract_strided_slice %21 {offsets = [0, 0], sizes = [8, 128], strides = [1, 1]} : vector<8x256xf32> to vector<8x128xf32>
    %23 = vector.extract_strided_slice %21 {offsets = [0, 128], sizes = [8, 128], strides = [1, 1]} : vector<8x256xf32> to vector<8x128xf32>
    %24 = arith.addf %22, %23 : vector<8x128xf32>
    %25 = vector.extract_strided_slice %24 {offsets = [0, 0], sizes = [8, 32], strides = [1, 1]} : vector<8x128xf32> to vector<8x32xf32>
    %cst_12 = arith.constant 0.000000e+00 : f32
    %26 = vector.broadcast %cst_12 : f32 to vector<8x32xf32>
    %27 = arith.subf %26, %25 : vector<8x32xf32>
    %28 = math.exp %27 : vector<8x32xf32>
    %cst_13 = arith.constant 1.000000e+00 : f32
    %29 = vector.broadcast %cst_13 : f32 to vector<8x32xf32>
    %30 = arith.addf %29, %28 : vector<8x32xf32>
    %cst_14 = arith.constant 1.000000e+00 : f32
    %31 = vector.broadcast %cst_14 : f32 to vector<8x32xf32>
    %32 = arith.divf %31, %30 : vector<8x32xf32>
    %33 = vector.extract_strided_slice %24 {offsets = [0, 32], sizes = [8, 32], strides = [1, 1]} : vector<8x128xf32> to vector<8x32xf32>
    %cst_15 = arith.constant 0.000000e+00 : f32
    %34 = vector.broadcast %cst_15 : f32 to vector<8x32xf32>
    %35 = arith.subf %34, %33 : vector<8x32xf32>
    %36 = math.exp %35 : vector<8x32xf32>
    %cst_16 = arith.constant 1.000000e+00 : f32
    %37 = vector.broadcast %cst_16 : f32 to vector<8x32xf32>
    %38 = arith.addf %37, %36 : vector<8x32xf32>
    %cst_17 = arith.constant 1.000000e+00 : f32
    %39 = vector.broadcast %cst_17 : f32 to vector<8x32xf32>
    %40 = arith.divf %39, %38 : vector<8x32xf32>
    %41 = vector.extract_strided_slice %24 {offsets = [0, 64], sizes = [8, 32], strides = [1, 1]} : vector<8x128xf32> to vector<8x32xf32>
    %cst_18 = arith.constant 0.000000e+00 : f32
    %42 = vector.broadcast %cst_18 : f32 to vector<8x32xf32>
    %43 = arith.subf %42, %41 : vector<8x32xf32>
    %44 = math.exp %43 : vector<8x32xf32>
    %cst_19 = arith.constant 1.000000e+00 : f32
    %45 = vector.broadcast %cst_19 : f32 to vector<8x32xf32>
    %46 = arith.addf %45, %44 : vector<8x32xf32>
    %cst_20 = arith.constant 1.000000e+00 : f32
    %47 = vector.broadcast %cst_20 : f32 to vector<8x32xf32>
    %48 = arith.divf %47, %46 : vector<8x32xf32>
    %49 = vector.extract_strided_slice %24 {offsets = [0, 96], sizes = [8, 32], strides = [1, 1]} : vector<8x128xf32> to vector<8x32xf32>
    %50 = math.tanh %49 : vector<8x32xf32>
    %51 = arith.mulf %32, %2 : vector<8x32xf32>
    %52 = arith.mulf %40, %50 : vector<8x32xf32>
    %53 = arith.addf %51, %52 : vector<8x32xf32>
    %54 = math.tanh %53 : vector<8x32xf32>
    %55 = arith.mulf %48, %54 : vector<8x32xf32>
    %c0_21 = arith.constant 0 : index
    %c0_22 = arith.constant 0 : index
    %56 = vector.load %arg6[%c0_21, %c0_22] : memref<8x32xf32, #tpu.memory_space<vmem>>, vector<8x32xf32>
    %c0_23 = arith.constant 0 : index
    %c0_24 = arith.constant 0 : index
    %57 = vector.load %arg7[%c0_23, %c0_24] : memref<8x32xf32, #tpu.memory_space<vmem>>, vector<8x32xf32>
    %58 = tpu.concatenate %55, %56 in 1 : vector<8x32xf32>, vector<8x32xf32> -> vector<8x64xf32>
    %c0_25 = arith.constant 0 : index
    %c0_26 = arith.constant 0 : index
    %59 = vector.load %arg5[%c0_25, %c0_26] : memref<64x256xf32, #tpu.memory_space<vmem>>, vector<64x256xf32>
    %cst_27 = arith.constant dense<0.000000e+00> : vector<8x256xf32>
    %60 = tpu.matmul %58, %59, %cst_27 {dimension_numbers = #tpu.dot_dimension_numbers<[1], [0], [0], [1], [0, 0, 1, 1], [], []>} : vector<8x64xf32>, vector<64x256xf32>, vector<8x256xf32> -> vector<8x256xf32>
    %cst_28 = arith.constant dense<0.000000e+00> : vector<256xf32>
    %61 = vector.multi_reduction <add>, %60, %cst_28 [0] : vector<8x256xf32> to vector<256xf32>
    %62 = vector.shape_cast %61 : vector<256xf32> to vector<1x256xf32>
    %cst_29 = arith.constant 8.000000e+00 : f32
    %63 = vector.broadcast %cst_29 : f32 to vector<1x256xf32>
    %64 = arith.divf %62, %63 : vector<1x256xf32>
    %65 = vector.broadcast %64 : vector<1x256xf32> to vector<8x256xf32>
    %66 = arith.subf %60, %65 : vector<8x256xf32>
    %67 = arith.mulf %66, %66 : vector<8x256xf32>
    %cst_30 = arith.constant dense<0.000000e+00> : vector<256xf32>
    %68 = vector.multi_reduction <add>, %67, %cst_30 [0] : vector<8x256xf32> to vector<256xf32>
    %69 = vector.shape_cast %68 : vector<256xf32> to vector<1x256xf32>
    %cst_31 = arith.constant 8.000000e+00 : f32
    %70 = vector.broadcast %cst_31 : f32 to vector<1x256xf32>
    %71 = arith.divf %69, %70 : vector<1x256xf32>
    %cst_32 = arith.constant 9.99999974E-6 : f32
    %72 = vector.broadcast %cst_32 : f32 to vector<1x256xf32>
    %73 = arith.addf %71, %72 : vector<1x256xf32>
    %74 = math.rsqrt %73 : vector<1x256xf32>
    %75 = vector.broadcast %74 : vector<1x256xf32> to vector<8x256xf32>
    %76 = arith.mulf %66, %75 : vector<8x256xf32>
    %77 = vector.extract_strided_slice %76 {offsets = [0, 0], sizes = [8, 128], strides = [1, 1]} : vector<8x256xf32> to vector<8x128xf32>
    %78 = vector.extract_strided_slice %76 {offsets = [0, 128], sizes = [8, 128], strides = [1, 1]} : vector<8x256xf32> to vector<8x128xf32>
    %79 = arith.addf %77, %78 : vector<8x128xf32>
    %80 = vector.extract_strided_slice %79 {offsets = [0, 0], sizes = [8, 32], strides = [1, 1]} : vector<8x128xf32> to vector<8x32xf32>
    %cst_33 = arith.constant 0.000000e+00 : f32
    %81 = vector.broadcast %cst_33 : f32 to vector<8x32xf32>
    %82 = arith.subf %81, %80 : vector<8x32xf32>
    %83 = math.exp %82 : vector<8x32xf32>
    %cst_34 = arith.constant 1.000000e+00 : f32
    %84 = vector.broadcast %cst_34 : f32 to vector<8x32xf32>
    %85 = arith.addf %84, %83 : vector<8x32xf32>
    %cst_35 = arith.constant 1.000000e+00 : f32
    %86 = vector.broadcast %cst_35 : f32 to vector<8x32xf32>
    %87 = arith.divf %86, %85 : vector<8x32xf32>
    %88 = vector.extract_strided_slice %79 {offsets = [0, 32], sizes = [8, 32], strides = [1, 1]} : vector<8x128xf32> to vector<8x32xf32>
    %cst_36 = arith.constant 0.000000e+00 : f32
    %89 = vector.broadcast %cst_36 : f32 to vector<8x32xf32>
    %90 = arith.subf %89, %88 : vector<8x32xf32>
    %91 = math.exp %90 : vector<8x32xf32>
    %cst_37 = arith.constant 1.000000e+00 : f32
    %92 = vector.broadcast %cst_37 : f32 to vector<8x32xf32>
    %93 = arith.addf %92, %91 : vector<8x32xf32>
    %cst_38 = arith.constant 1.000000e+00 : f32
    %94 = vector.broadcast %cst_38 : f32 to vector<8x32xf32>
    %95 = arith.divf %94, %93 : vector<8x32xf32>
    %96 = vector.extract_strided_slice %79 {offsets = [0, 64], sizes = [8, 32], strides = [1, 1]} : vector<8x128xf32> to vector<8x32xf32>
    %cst_39 = arith.constant 0.000000e+00 : f32
    %97 = vector.broadcast %cst_39 : f32 to vector<8x32xf32>
    %98 = arith.subf %97, %96 : vector<8x32xf32>
    %99 = math.exp %98 : vector<8x32xf32>
    %cst_40 = arith.constant 1.000000e+00 : f32
    %100 = vector.broadcast %cst_40 : f32 to vector<8x32xf32>
    %101 = arith.addf %100, %99 : vector<8x32xf32>
    %cst_41 = arith.constant 1.000000e+00 : f32
    %102 = vector.broadcast %cst_41 : f32 to vector<8x32xf32>
    %103 = arith.divf %102, %101 : vector<8x32xf32>
    %104 = vector.extract_strided_slice %79 {offsets = [0, 96], sizes = [8, 32], strides = [1, 1]} : vector<8x128xf32> to vector<8x32xf32>
    %105 = math.tanh %104 : vector<8x32xf32>
    %106 = arith.mulf %87, %57 : vector<8x32xf32>
    %107 = arith.mulf %95, %105 : vector<8x32xf32>
    %108 = arith.addf %106, %107 : vector<8x32xf32>
    %109 = math.tanh %108 : vector<8x32xf32>
    %110 = arith.mulf %103, %109 : vector<8x32xf32>
    %c0_42 = arith.constant 0 : index
    %c0_43 = arith.constant 0 : index
    %111 = vector.load %arg8[%c0_42, %c0_43] : memref<32x128xf32, #tpu.memory_space<vmem>>, vector<32x128xf32>
    %cst_44 = arith.constant dense<0.000000e+00> : vector<8x128xf32>
    %112 = tpu.matmul %110, %111, %cst_44 {dimension_numbers = #tpu.dot_dimension_numbers<[1], [0], [0], [1], [0, 0, 1, 1], [], []>} : vector<8x32xf32>, vector<32x128xf32>, vector<8x128xf32> -> vector<8x128xf32>
    %c0_45 = arith.constant 0 : index
    %c0_46 = arith.constant 0 : index
    %113 = vector.load %arg9[%c0_45, %c0_46] : memref<1x128xf32, #tpu.memory_space<vmem>>, vector<1x128xf32>
    %114 = vector.broadcast %113 : vector<1x128xf32> to vector<8x128xf32>
    %115 = arith.addf %112, %114 : vector<8x128xf32>
    %116 = tpu.concatenate %55, %53, %110, %108, %115 in 1 : vector<8x32xf32>, vector<8x32xf32>, vector<8x32xf32>, vector<8x32xf32>, vector<8x128xf32> -> vector<8x256xf32>
    %c0_47 = arith.constant 0 : index
    %c0_48 = arith.constant 0 : index
    %117 = vector.load %arg10[%c0_47, %c0_48] : memref<8x256xf32, #tpu.memory_space<vmem>>, vector<8x256xf32>
    tpu.vector_store %arg10[%c0_47, %c0_48], %116 {strides = array<i32>} : memref<8x256xf32, #tpu.memory_space<vmem>>, vector<8x256xf32>,
    return
  }
  func.func @transform_0(%arg0: i32) -> (i32, i32) {
    %c0_i32 = arith.constant 0 : i32
    %c0_i32_0 = arith.constant 0 : i32
    %c0_i32_1 = arith.constant 0 : i32
    return %c0_i32, %c0_i32_0 : i32, i32
  }
  func.func @transform_1(%arg0: i32) -> (i32, i32) {
    %c0_i32 = arith.constant 0 : i32
    %c0_i32_0 = arith.constant 0 : i32
    %c0_i32_1 = arith.constant 0 : i32
    return %c0_i32, %c0_i32_0 : i32, i32
  }
  func.func @transform_2(%arg0: i32) -> (i32, i32) {
    %c0_i32 = arith.constant 0 : i32
    %c0_i32_0 = arith.constant 0 : i32
    %c0_i32_1 = arith.constant 0 : i32
    return %c0_i32, %c0_i32_0 : i32, i32
  }
  func.func @transform_3(%arg0: i32) -> (i32, i32) {
    %c0_i32 = arith.constant 0 : i32
    %c0_i32_0 = arith.constant 0 : i32
    %c0_i32_1 = arith.constant 0 : i32
    return %c0_i32, %c0_i32_0 : i32, i32
  }
  func.func @transform_4(%arg0: i32) -> (i32, i32) {
    %c0_i32 = arith.constant 0 : i32
    %c0_i32_0 = arith.constant 0 : i32
    %c0_i32_1 = arith.constant 0 : i32
    return %c0_i32, %c0_i32_0 : i32, i32
  }
  func.func @transform_5(%arg0: i32) -> (i32, i32) {
    %c0_i32 = arith.constant 0 : i32
    %c0_i32_0 = arith.constant 0 : i32
    %c0_i32_1 = arith.constant 0 : i32
    return %c0_i32, %c0_i32_0 : i32, i32
  }
  func.func @transform_6(%arg0: i32) -> (i32, i32) {
    %c0_i32 = arith.constant 0 : i32
    %c0_i32_0 = arith.constant 0 : i32
    %c0_i32_1 = arith.constant 0 : i32
    return %c0_i32, %c0_i32_0 : i32, i32
  }
  func.func @transform_7(%arg0: i32) -> (i32, i32) {
    %c0_i32 = arith.constant 0 : i32
    %c0_i32_0 = arith.constant 0 : i32
    %c0_i32_1 = arith.constant 0 : i32
    return %c0_i32, %c0_i32_0 : i32, i32
  }
  func.func @transform_8(%arg0: i32) -> (i32, i32) {
    %c0_i32 = arith.constant 0 : i32
    %c0_i32_0 = arith.constant 0 : i32
    %c0_i32_1 = arith.constant 0 : i32
    return %c0_i32, %c0_i32_0 : i32, i32
  }
  func.func @transform_9(%arg0: i32) -> (i32, i32) {
    %c0_i32 = arith.constant 0 : i32
    %c0_i32_0 = arith.constant 0 : i32
    %c0_i32_1 = arith.constant 0 : i32
    return %c0_i32, %c0_i32_0 : i32, i32
  }
}

</mosaic_0001>

<bundles_post_ra>
// kernel: clean_lstm_forward.1
= control target key start
LH: loop header
LB: loop body
LE: loop exit
PB: predicated region body
PF: predicated region fallthrough
CT: control target
= control target key end

     0   :  { %v541_v3 = vmov 0.0   ;;  %s542_s15 = smov 8   ;;  %vm39_vm0 = vcmask 64512   ;;  %vm51_vm1 = vcmask 326656   ;;  %s545_s23 = smov 32   ;;  %vm200_vm2 = vcmask 261120   ;;  %s739_s2 = inlined_call_operand.vmem [shape: f32[8,32], index: 2, kind: input, shape index: {}]   ;;  %s740_s1 = inlined_call_operand.vmem [shape: f32[40,256], index: 1, kind: input, shape index: {}]   ;;  %s741_s0 = inlined_call_operand.vmem [shape: f32[8,8], index: 0, kind: input, shape index: {}]   ;;  %s742_s3 = inlined_call_operand.vmem [shape: f32[8,32], index: 3, kind: input, shape index: {}]   ;;  %s743_s4 = inlined_call_operand.vmem [shape: f32[64,256], index: 4, kind: input, shape index: {}]   ;;  %s744_s5 = inlined_call_operand.vmem [shape: f32[8,32], index: 5, kind: input, shape index: {}]   ;;  %s745_s6 = inlined_call_operand.vmem [shape: f32[8,32], index: 6, kind: input, shape index: {}]   ;;  %s746_s7 = inlined_call_operand.vmem [shape: f32[32,128], index: 7, kind: input, shape index: {}]   ;;  %s747_s9 = inlined_call_operand.vmem [shape: f32[8,256], index: 9, kind: output, shape index: {}]   ;;  %s748_s8 = inlined_call_operand.vmem [shape: f32[1,128], index: 8, kind: input, shape index: {}]  }
   0x1   :  { %v33_v0 = vld [vmem:[%s739_s2] sm:$0xff]  ;;  %v42_v1 = vld [vmem:[%s740_s1 + $0x8] sm:$0xff]  ;;  %v44_v2 = vld [vmem:[%s740_s1 + $0x18] sm:$0xff]  ;;  %119 = vmatprep.mubr.f32.mxu0 %v541_v3  ;;  %286 = vmatprep.mubr.f32.mxu1 %v541_v3  ;;  %vm218_vm3 = vcmask 523264   ;;  %vm547_vm4 = vmmov 0   ;;  %vm452_vm5 = vcmask 785408  }
   0x2   :  { %36 = vrot.lane.b32.xlu0 %v33_v0, %s542_s15  ;;  %v480_v4 = vpack.c.bf16 %v44_v2, %v42_v1  ;;  %v41_v5 = vld [vmem:[%s740_s1] sm:$0xff]  ;;  %v43_v6 = vld [vmem:[%s740_s1 + $0x10] sm:$0xff]  ;;  %v46_v7 = vld [vmem:[%s740_s1 + $0x28] sm:$0xff] }
   0x3   :  { %v482_v8 = vpack.c.bf16 %v43_v6, %v41_v5  ;;  %v48_v9 = vld [vmem:[%s740_s1 + $0x38] sm:$0xff]  ;;  %v45_v10 = vld [vmem:[%s740_s1 + $0x20] sm:$0xff]  ;;  %v47_v11 = vld [vmem:[%s740_s1 + $0x30] sm:$0xff] }
   0x4   :  { %481 = vmatprep.subr.bf16.mxu0 %v480_v4  ;;  %v484_v12 = vpack.c.bf16 %v48_v9, %v46_v7  ;;  %v486_v13 = vpack.c.bf16 %v47_v11, %v45_v10  ;;  %v50_v14 = vld [vmem:[%s740_s1 + $0x48] sm:$0xff]  ;;  %v49_v15 = vld [vmem:[%s740_s1 + $0x40] sm:$0xff]  ;;  %s544_s1 = smov 96   ;;  %v205_v10 = vld [vmem:[%s743_s4 + $0x18] sm:$0xff] }
   0x5   :  { %483 = vmatpush1.bf16.msra.mxu0 %v482_v8  ;;  %v32_v16 = vld [vmem:[%s741_s0] sm:$0xff]  ;;  %s543_s0 = smov 64   ;;  %v203_v9 = vld [vmem:[%s743_s4 + $0x8] sm:$0xff] }
   0x6   :  { %485 = vmatprep.subr.bf16.mxu0 %v484_v12  ;;  %v34_v5 = vld [vmem:[%s742_s3] sm:$0xff]  ;;  %v488_v12 = vpack.c.bf16 %v205_v10, %v203_v9 }
   0x7   :  { %v202_v11 = vld [vmem:[%s743_s4] sm:$0xff] }
   0x8   :  { %489 = vmatprep.subr.bf16.mxu1 %v488_v12 }
   0x9   :  { %487 = vmatpush1.bf16.msra.mxu0 %v486_v13  ;;  %v204_v13 = vld [vmem:[%s743_s4 + $0x10] sm:$0xff] }
   0xa   :  { %63 = vmatprep.subr.mxu0 %v50_v14  ;;  %v207_v14 = vld [vmem:[%s743_s4 + $0x28] sm:$0xff] }
   0xd   :  { %64 = vmatpush1.msra.mxu0 %v49_v15  ;;  %v209_v15 = vld [vmem:[%s743_s4 + $0x38] sm:$0xff] }
  0x74   :  { %v37_v17 = vpop.permute.xlu0 %36 }
  0x75   :  { %v40_v18 = vsel %vm39_vm0, %v32_v16, %v37_v17  ;;  %v490_v16 = vpack.c.bf16 %v204_v13, %v202_v11  ;;  %v492_v17 = vpack.c.bf16 %v209_v15, %v207_v14 }
  0x76   :  { %460 = vmatmul.mubr.msk.f32.vlgmr.msra.gmra.mrb[0].mxu0 %vm51_vm1, %v40_v18  ;;  %v206_v18 = vld [vmem:[%s743_s4 + $0x20] sm:$0xff] }
  0x77   :  { %491 = vmatpush1.bf16.msra.mxu1 %v490_v16  ;;  %477 = vmatprep.mubr.msk.f32.mxu0 %vm547_vm4, %v541_v3 }
  0x78   :  { %493 = vmatprep.subr.bf16.mxu1 %v492_v17 }
 0x149   :  { %v121_v19 = vpop.f32.mrb[0].mxu0 }
 0x14a   :  { %v126_v20 = vrot.slane %v121_v19, 4  ;;  %v123_v21 = vpop.f32.mrb[1].mxu0 }
 0x14b   :  { %v132_v22 = vrot.slane %v123_v21, 4 }
 0x14c   :  { %v127_v23 = vadd.f32 %v126_v20, %v121_v19  ;;  %v211_v20 = vld [vmem:[%s743_s4 + $0x48] sm:$0xff] }
 0x14d   :  { %v133_v24 = vadd.f32 %v132_v22, %v123_v21 }
 0x14e   :  { %v128_v25 = vrot.slane %v127_v23, 2 }
 0x14f   :  { %v134_v26 = vrot.slane %v133_v24, 2 }
 0x150   :  { %v129_v27 = vadd.f32 %v128_v25, %v127_v23  ;;  %v212_v25 = vld [vmem:[%s743_s4 + $0x50] sm:$0xff] }
 0x151   :  { %v135_v28 = vadd.f32 %v134_v26, %v133_v24  ;;  %v210_v24 = vld [vmem:[%s743_s4 + $0x40] sm:$0xff]  ;;  %v215_v26 = vld [vmem:[%s743_s4 + $0x68] sm:$0xff] }
 0x152   :  { %v130_v29 = vrot.slane %v129_v27, 1 }
 0x153   :  { %v136_v30 = vrot.slane %v135_v28, 1 }
 0x154   :  { %v131_v31 = vadd.f32 %v130_v29, %v129_v27  ;;  %v217_v27 = vld [vmem:[%s743_s4 + $0x78] sm:$0xff] }
 0x155   :  { %v137_v32 = vadd.f32 %v136_v30, %v135_v28  ;;  %v498_v28 = vpack.c.bf16 %v212_v25, %v210_v24  ;;  %v500_v30 = vpack.c.bf16 %v217_v27, %v215_v26  ;;  %v191_v27 = vld [vmem:[%s745_s6] sm:$0xff] }
 0x156   :  { %v139_v33 = vmul.f32 0.125, %v131_v31  ;;  %v214_v31 = vld [vmem:[%s743_s4 + $0x60] sm:$0xff] }
 0x157   :  { %v140_v34 = vmul.f32 0.125, %v137_v32  ;;  %v216_v32 = vld [vmem:[%s743_s4 + $0x70] sm:$0xff] }
 0x158   :  { %v141_v35 = vsub.f32 %v121_v19, %v139_v33  ;;  %v208_v19 = vld [vmem:[%s743_s4 + $0x30] sm:$0xff]  ;;  %v190_v33 = vld [vmem:[%s744_s5] sm:$0xff] }
 0x159   :  { %v142_v36 = vsub.f32 %v123_v21, %v140_v34  ;;  %v213_v21 = vld [vmem:[%s743_s4 + $0x58] sm:$0xff]  ;;  %v494_v22 = vpack.c.bf16 %v208_v19, %v206_v18  ;;  %v502_v34 = vpack.c.bf16 %v216_v32, %v214_v31  ;;  %v546_v31 = vmov 0.0|0.0   ;;  %v356_v32 = vld [vmem:[%s746_s7] sm:$0xff] }
 0x15a   :  { %v143_v37 = vmul.f32 %v141_v35, %v141_v35  ;;  %v496_v23 = vpack.c.bf16 %v213_v21, %v211_v20  ;;  %504 = vmatprep.subr.bf16.mxu0 %v546_v31 }
 0x15b   :  { %v144_v38 = vmul.f32 %v142_v36, %v142_v36  ;;  %495 = vmatpush1.bf16.msra.mxu1 %v494_v22 }
 0x15c   :  { %v145_v39 = vrot.slane %v143_v37, 4  ;;  %497 = vmatprep.subr.bf16.mxu1 %v496_v23 }
 0x15d   :  { %v151_v40 = vrot.slane %v144_v38, 4 }
 0x15e   :  { %v146_v41 = vadd.f32 %v145_v39, %v143_v37 }
 0x15f   :  { %v152_v42 = vadd.f32 %v151_v40, %v144_v38  ;;  %499 = vmatpush1.bf16.msra.mxu1 %v498_v28 }
 0x160   :  { %v147_v43 = vrot.slane %v146_v41, 2  ;;  %501 = vmatprep.subr.bf16.mxu1 %v500_v30 }
 0x161   :  { %v153_v44 = vrot.slane %v152_v42, 2 }
 0x162   :  { %v148_v45 = vadd.f32 %v147_v43, %v146_v41 }
 0x163   :  { %v154_v46 = vadd.f32 %v153_v44, %v152_v42  ;;  %503 = vmatpush1.bf16.msra.mxu1 %v502_v34  ;;  %v358_v34 = vld [vmem:[%s746_s7 + $0x10] sm:$0xff] }
 0x164   :  { %v149_v47 = vrot.slane %v148_v45, 1 }
 0x165   :  { %v155_v48 = vrot.slane %v154_v46, 1 }
 0x166   :  { %v150_v49 = vadd.f32 %v149_v47, %v148_v45 }
 0x167   :  { %v156_v50 = vadd.f32 %v155_v48, %v154_v46 }
 0x168   :  { %v157_v51 = vmul.f32 0.125, %v150_v49 }
 0x169   :  { %v158_v52 = vmul.f32 0.125, %v156_v50 }
 0x16a   :  { %v159_v53 = vadd.f32 1e-05, %v157_v51 }
 0x16b   :  { %v160_v54 = vadd.f32 1e-05, %v158_v52 }
 0x16c   :  { %517 = vrsqrt.f32 %v159_v53 }
 0x16d   :  { %519 = vrsqrt.f32 %v160_v54 }
 0x176   :  { %v518_v55 = vpop.eup %517 }
 0x177   :  { %v520_v56 = vpop.eup %519  ;;  %v163_v57 = vmul.f32 %v518_v55, %v141_v35 }
 0x178   :  { %v164_v58 = vmul.f32 %v520_v56, %v142_v36 }
 0x17a   :  { %v165_v59 = vadd.f32 %v164_v58, %v163_v57 }
 0x17c   :  { %521 = vtanh.f32 %v165_v59  ;;  %v166_v61 = vsub.f32 0.0, %v165_v59 }
 0x17e   :  { %v167_v62 = vmul.f32 1.442695, %v166_v61 }
 0x180   :  { %523 = vpow2.f32 %v167_v62 }
 0x186   :  { %v522_v60 = vpop.eup %521 }
 0x187   :  { %175 = vrot.lane.b32.xlu0 %v522_v60, %s543_s0 }
 0x18a   :  { %v524_v63 = vpop.eup %523 }
 0x18b   :  { %v169_v0 = vadd.f32 1.0, %v524_v63 }
 0x18d   :  { %525 = vrcp.f32 %v169_v0 }
 0x197   :  { %v526_v1 = vpop.eup %525 }
 0x198   :  { %v173_v6 = vmul.f32 %v526_v1, %v34_v5 }
 0x1f9   :  { %v176_v2 = vpop.permute.xlu0 %175 }
 0x1fa   :  { %v178_v4 = vmul.f32 %v526_v1, %v176_v2 }
 0x1fc   :  { %180 = vrot.lane.b32.xlu1 %v178_v4, %s544_s1 }
 0x26e   :  { %v181_v7 = vpop.permute.xlu1 %180 }
 0x26f   :  { %v641_v8 = vadd.f32 %v181_v7, %v173_v6 }
 0x271   :  { %527 = vtanh.f32 %v641_v8 }
 0x27b   :  { %v528_v29 = vpop.eup %527 }
 0x27c   :  { %186 = vrot.lane.b32.xlu1 %v528_v29, %s543_s0 }
 0x280   :  { %197 = vrot.lane.b32.xlu1 %v190_v33, %s545_s23  ;;  %v357_v33 = vld [vmem:[%s746_s7 + $0x8] sm:$0xff] }
 0x2ee   :  { %v187_v35 = vpop.permute.xlu1 %186 }
 0x2ef   :  { %v189_v36 = vmul.f32 %v526_v1, %v187_v35  ;;  %v505_v35 = vpack.c.bf16 %v357_v33, %v356_v32 }
 0x2f1   :  { %193 = vrot.lane.b32.xlu0 %v189_v36, %s543_s0  ;;  %v359_v36 = vld [vmem:[%s746_s7 + $0x18] sm:$0xff]  ;;  %506 = vmatpush3.bf16.msra.mxu0 %v505_v35 }
 0x2f2   :  { %v198_v37 = vpop.permute.xlu1 %197  ;;  %507 = vmatprep.subr.bf16.mxu0 %v546_v31 }
 0x363   :  { %v698_v38 = vpop.permute.xlu0 %193 }
 0x364   :  { %v201_v39 = vsel %vm200_vm2, %v698_v38, %v198_v37  ;;  %v508_v37 = vpack.c.bf16 %v359_v36, %v358_v34 }
 0x365   :  { %461 = vmatmul.mubr.msk.f32.vlgmr.msra.gmra.mrb[0].mxu1 %vm218_vm3, %v201_v39 }
 0x366   :  { %509 = vmatpush3.bf16.msra.mxu0 %v508_v37 }
 0x438   :  { %v288_v40 = vpop.f32.mrb[0].mxu1 }
 0x439   :  { %v293_v41 = vrot.slane %v288_v40, 4  ;;  %v290_v42 = vpop.f32.mrb[1].mxu1 }
 0x43a   :  { %v299_v43 = vrot.slane %v290_v42, 4 }
 0x43b   :  { %v294_v44 = vadd.f32 %v293_v41, %v288_v40 }
 0x43c   :  { %v300_v45 = vadd.f32 %v299_v43, %v290_v42 }
 0x43d   :  { %v295_v46 = vrot.slane %v294_v44, 2 }
 0x43e   :  { %v301_v47 = vrot.slane %v300_v45, 2 }
 0x43f   :  { %v296_v48 = vadd.f32 %v295_v46, %v294_v44 }
 0x440   :  { %v302_v49 = vadd.f32 %v301_v47, %v300_v45 }
 0x441   :  { %v297_v50 = vrot.slane %v296_v48, 1 }
 0x442   :  { %v303_v51 = vrot.slane %v302_v49, 1 }
 0x443   :  { %v298_v52 = vadd.f32 %v297_v50, %v296_v48 }
 0x444   :  { %v304_v53 = vadd.f32 %v303_v51, %v302_v49 }
 0x445   :  { %v305_v54 = vmul.f32 0.125, %v298_v52 }
 0x446   :  { %v306_v55 = vmul.f32 0.125, %v304_v53 }
 0x447   :  { %v307_v56 = vsub.f32 %v288_v40, %v305_v54 }
 0x448   :  { %v308_v57 = vsub.f32 %v290_v42, %v306_v55 }
 0x449   :  { %v309_v58 = vmul.f32 %v307_v56, %v307_v56 }
 0x44a   :  { %v310_v59 = vmul.f32 %v308_v57, %v308_v57 }
 0x44b   :  { %v311_v60 = vrot.slane %v309_v58, 4 }
 0x44c   :  { %v317_v61 = vrot.slane %v310_v59, 4 }
 0x44d   :  { %v312_v62 = vadd.f32 %v311_v60, %v309_v58 }
 0x44e   :  { %v318_v63 = vadd.f32 %v317_v61, %v310_v59 }
 0x44f   :  { %v313_v0 = vrot.slane %v312_v62, 2 }
 0x450   :  { %v319_v1 = vrot.slane %v318_v63, 2 }
 0x451   :  { %v314_v2 = vadd.f32 %v313_v0, %v312_v62 }
 0x452   :  { %v320_v4 = vadd.f32 %v319_v1, %v318_v63 }
 0x453   :  { %v315_v5 = vrot.slane %v314_v2, 1 }
 0x454   :  { %v321_v6 = vrot.slane %v320_v4, 1 }
 0x455   :  { %v316_v7 = vadd.f32 %v315_v5, %v314_v2 }
 0x456   :  { %v322_v9 = vadd.f32 %v321_v6, %v320_v4 }
 0x457   :  { %v323_v10 = vmul.f32 0.125, %v316_v7 }
 0x458   :  { %v324_v11 = vmul.f32 0.125, %v322_v9 }
 0x459   :  { %v325_v12 = vadd.f32 1e-05, %v323_v10 }
 0x45a   :  { %v326_v13 = vadd.f32 1e-05, %v324_v11 }
 0x45b   :  { %529 = vrsqrt.f32 %v325_v12 }
 0x45c   :  { %531 = vrsqrt.f32 %v326_v13 }
 0x465   :  { %v530_v14 = vpop.eup %529 }
 0x466   :  { %v532_v15 = vpop.eup %531  ;;  %v329_v16 = vmul.f32 %v530_v14, %v307_v56 }
 0x467   :  { %v330_v17 = vmul.f32 %v532_v15, %v308_v57 }
 0x469   :  { %v331_v18 = vadd.f32 %v330_v17, %v329_v16 }
 0x46b   :  { %533 = vtanh.f32 %v331_v18  ;;  %v332_v20 = vsub.f32 0.0, %v331_v18 }
 0x46d   :  { %v333_v21 = vmul.f32 1.442695, %v332_v20 }
 0x46f   :  { %535 = vpow2.f32 %v333_v21 }
 0x475   :  { %v534_v19 = vpop.eup %533 }
 0x476   :  { %341 = vrot.lane.b32.xlu0 %v534_v19, %s543_s0 }
 0x479   :  { %v536_v22 = vpop.eup %535 }
 0x47a   :  { %v335_v23 = vadd.f32 1.0, %v536_v22 }
 0x47c   :  { %537 = vrcp.f32 %v335_v23 }
 0x486   :  { %v538_v24 = vpop.eup %537 }
 0x487   :  { %v339_v28 = vmul.f32 %v538_v24, %v191_v27 }
 0x4e8   :  { %v342_v25 = vpop.permute.xlu0 %341 }
 0x4e9   :  { %v344_v26 = vmul.f32 %v538_v24, %v342_v25 }
 0x4eb   :  { %346 = vrot.lane.b32.xlu1 %v344_v26, %s544_s1 }
 0x55d   :  { %v347_v29 = vpop.permute.xlu1 %346 }
 0x55e   :  { %v349_v30 = vadd.f32 %v347_v29, %v339_v28 }
 0x560   :  { %539 = vtanh.f32 %v349_v30 }
 0x56a   :  { %v540_v39 = vpop.eup %539 }
 0x56b   :  { %352 = vrot.lane.b32.xlu0 %v540_v39, %s543_s0 }
 0x56f   :  { %443 = vrot.lane.b32.xlu0 %v641_v8, %s545_s23  ;;  %v462_v8 = vld [vmem:[%s748_s8] ss:$0 sm:$0xff] }
 0x5dd   :  { %v353_v40 = vpop.permute.xlu0 %352 }
 0x5de   :  { %v355_v41 = vmul.f32 %v538_v24, %v353_v40 }
 0x5e0   :  { %368 = vrot.lane.b32.xlu1 %v355_v41, %s543_s0 }
 0x5e1   :  { %v444_v3 = vpop.permute.xlu0 %443 }
 0x5e2   :  { %v450_v43 = vsel %vm200_vm2, %v698_v38, %v444_v3 }
 0x5e3   :  { %v451_v45 = vsel %vm218_vm3, %v450_v43, %v355_v41 }
 0x5e4   :  { %447 = vrot.lane.b32.xlu1 %v349_v30, %s544_s1 }
 0x652   :  { %v369_v42 = vpop.permute.xlu1 %368 }
 0x653   :  { %478 = vmatmul.mubr.msk.f32.vlgmr.msra.gmra.mrb[2].mxu0 %vm200_vm2, %v369_v42 }
 0x656   :  { %v448_v44 = vpop.permute.xlu1 %447 }
 0x657   :  { %v453_v46 = vsel %vm452_vm5, %v451_v45, %v448_v44 }
 0x658   :  { %454 = vst [vmem:[%s747_s9] sm:$0xff] %v453_v46 }
 0x726   :  { %v438_v47 = vpop.f32.mrb[2].mxu0 }
 0x727   :  { %v439_v48 = vadd.f32 %v462_v8, %v438_v47  ;;  %v479_v49 = vpop.f32.mrb[3].mxu0 }
 0x729   :  { %455 = vst [vmem:[%s747_s9 + $0x8] sm:$0xff] %v439_v48 }

</bundles_post_ra>
